<compile_context>
chip_gen: v7x
topology: tpu7x:2x2x1
jax: 0.10.0
libtpu: 0.0.40
codegen_flags: <defaults>
</compile_context>

<pallas_src>
import functools

import jax
import jax.numpy as jnp
from jax.experimental import pallas as pl
from jax.experimental.pallas import tpu as pltpu


def _mlp_kernel(x_ref,
                w1_ref, b1_ref,
                w2_ref, b2_ref,
                w3_ref, b3_ref,
                w4_ref, b4_ref,
                w5_ref, b5_ref,
                o_ref):
    """Fused forward pass for one batch tile, batch along lanes.

    Shapes inside the kernel (T = batch tile, lane dim):
      x_ref : (D_in, T)
      w_k   : (out_k, in_k)   -- PyTorch nn.Linear.weight orientation
      b_k   : (out_k, 1)
      o_ref : (D_out, T)

    y1 = tanh(W1 @ x  + b1)
    y2 = tanh(W2 @ y1 + b2)
    y3 = tanh(W3 @ y2 + b3) + y1
    y4 = tanh(W4 @ y3 + b4) + y2
    y  =      W5 @ y4 + b5
    """
    x = x_ref[...].astype(jnp.float32)

    y1 = jnp.tanh(
        jnp.dot(w1_ref[...], x, preferred_element_type=jnp.float32) + b1_ref[...])
    y2 = jnp.tanh(
        jnp.dot(w2_ref[...], y1, preferred_element_type=jnp.float32) + b2_ref[...])
    y3 = jnp.tanh(
        jnp.dot(w3_ref[...], y2, preferred_element_type=jnp.float32) + b3_ref[...]) + y1
    y4 = jnp.tanh(
        jnp.dot(w4_ref[...], y3, preferred_element_type=jnp.float32) + b4_ref[...]) + y2
    y = jnp.dot(w5_ref[...], y4, preferred_element_type=jnp.float32) + b5_ref[...]

    o_ref[...] = y.astype(o_ref.dtype)


@functools.partial(jax.jit, static_argnames=("tile_batch",))
def multilayer_net_forward(x, params, *, tile_batch=2048):
    """Run the fused MLP Pallas kernel.

    x: (N, D_in) float32 (any N; padded internally to a multiple of the tile)
    params: dict with W1..W5 of shape (out, in) and b1..b5 of shape (out, 1)
            (i.e. the native PyTorch nn.Linear orientation).
    tile_batch: desired batch tile (rounded down to a multiple of 128).
                Keep <= ~8192 on v7x (64 MiB VMEM); larger is fine on v5e/v6e.
    """
    N, D_in = x.shape
    H = params["W1"].shape[0]
    D_out = params["W5"].shape[0]

    # Lane tile must be a multiple of 128; don't make it larger than the
    # (128-rounded) batch.
    tile = max(128, (int(tile_batch) // 128) * 128)
    tile = min(tile, pl.cdiv(N, 128) * 128)
    n_pad = pl.cdiv(N, tile) * tile

    # Transpose so batch runs along lanes; pad the batch to the tile.
    xT = jnp.transpose(x)                       # (D_in, N)
    if n_pad != N:
        xT = jnp.pad(xT, ((0, 0), (0, n_pad - N)))

    grid = (n_pad // tile,)

    def const_spec(shape):
        # Full-array weight/bias block, same block index every grid step ->
        # fetched once by the pipeline and kept resident in VMEM.
        return pl.BlockSpec(shape, lambda i: (0, 0))

    in_specs = [
        pl.BlockSpec((D_in, tile), lambda i: (0, i)),      # x tile (batch on lanes)
        const_spec((H, D_in)), const_spec((H, 1)),         # W1, b1
        const_spec((H, H)),    const_spec((H, 1)),         # W2, b2
        const_spec((H, H)),    const_spec((H, 1)),         # W3, b3
        const_spec((H, H)),    const_spec((H, 1)),         # W4, b4
        const_spec((D_out, H)), const_spec((D_out, 1)),    # W5, b5
    ]
    # Lane-dense output block: (D_out, tile) with tile a multiple of 128.
    out_spec = pl.BlockSpec((D_out, tile), lambda i: (0, i))

    fn = pl.pallas_call(
        _mlp_kernel,
        out_shape=jax.ShapeDtypeStruct((D_out, n_pad), x.dtype),
        grid_spec=pltpu.PrefetchScalarGridSpec(
            num_scalar_prefetch=0,
            grid=grid,
            in_specs=in_specs,
            out_specs=out_spec,
        ),
        compiler_params=pltpu.CompilerParams(
            dimension_semantics=("parallel",)),
    )
    outT = fn(
        xT,
        params["W1"], params["b1"],
        params["W2"], params["b2"],
        params["W3"], params["b3"],
        params["W4"], params["b4"],
        params["W5"], params["b5"],
    )
    # Drop padding, return in the usual (N, D_out) orientation.
    return jnp.transpose(outT[:, :N])


def init_params(key, D_in, H, D_out):
    """Deterministic init matching the PyTorch module's init scheme.

    Weights ~ N(0, sqrt(2/(fan_in+fan_out))), biases ~ N(0, 1).
    Weights stored as (out, in) == torch.nn.Linear.weight; biases as (out, 1).
    """
    ks = jax.random.split(key, 10)

    def w(k, fin, fout):
        std = jnp.sqrt(2.0 / (fin + fout)).astype(jnp.float32)
        return std * jax.random.normal(k, (fout, fin), dtype=jnp.float32)

    def b(k, fout):
        return jax.random.normal(k, (fout, 1), dtype=jnp.float32)

    return {
        "W1": w(ks[0], D_in, H), "b1": b(ks[1], H),
        "W2": w(ks[2], H, H),    "b2": b(ks[3], H),
        "W3": w(ks[4], H, H),    "b3": b(ks[5], H),
        "W4": w(ks[6], H, H),    "b4": b(ks[7], H),
        "W5": w(ks[8], H, D_out), "b5": b(ks[9], D_out),
    }


def reference_forward(x, p):
    """Pure-JAX reference of the PyTorch forward pass (x: (N, D_in))."""
    y1 = jnp.tanh(x @ p["W1"].T + p["b1"].T)
    y2 = jnp.tanh(y1 @ p["W2"].T + p["b2"].T)
    y3 = jnp.tanh(y2 @ p["W3"].T + p["b3"].T) + y1
    y4 = jnp.tanh(y3 @ p["W4"].T + p["b4"].T) + y2
    return y4 @ p["W5"].T + p["b5"].T


if __name__ == "__main__":
    # Heat-equation PINN: input = (x, t) -> D_in = 2, hidden H = 32, scalar output.
    D_in, H, D_out = 2, 32, 1
    N = 200  # deliberately NOT a multiple of 128: exercises the padded tail tile

    key = jax.random.PRNGKey(0)
    k_params, k_x = jax.random.split(key)

    params = init_params(k_params, D_in, H, D_out)
    x = jax.random.normal(k_x, (N, D_in), dtype=jnp.float32)

    # Small tile here so the toy batch still produces a multi-step parallel grid.
    y = multilayer_net_forward(x, params, tile_batch=128)
    y = jax.block_until_ready(y)

    y_ref = reference_forward(x, params)
    assert y.shape == (N, D_out)
    assert jnp.allclose(y, y_ref, atol=1e-5, rtol=1e-5), "mismatch vs reference"

    print("KERNEL_OK")
</pallas_src>

<mosaic_0001>
module attributes {stable_mosaic.version = 11 : i64} {
  func.func @_mlp_kernel(%arg0: i32, %arg1: memref<2x128xf32, #tpu.memory_space<vmem>>, %arg2: memref<32x2xf32, #tpu.memory_space<vmem>>, %arg3: memref<32x1xf32, #tpu.memory_space<vmem>>, %arg4: memref<32x32xf32, #tpu.memory_space<vmem>>, %arg5: memref<32x1xf32, #tpu.memory_space<vmem>>, %arg6: memref<32x32xf32, #tpu.memory_space<vmem>>, %arg7: memref<32x1xf32, #tpu.memory_space<vmem>>, %arg8: memref<32x32xf32, #tpu.memory_space<vmem>>, %arg9: memref<32x1xf32, #tpu.memory_space<vmem>>, %arg10: memref<1x32xf32, #tpu.memory_space<vmem>>, %arg11: memref<1x1xf32, #tpu.memory_space<vmem>>, %arg12: memref<1x128xf32, #tpu.memory_space<vmem>>) attributes {dimension_semantics = [#tpu.dimension_semantics<parallel>], iteration_bounds = array<i64: 2>, scalar_prefetch = 0 : i64, scratch_operands = 0 : i64, tpu.core_type = #tpu.core_type<tc>, window_params = [{transform_indices = @transform_0, window_bounds = array<i64: 2, 128>}, {pipeline_mode = #tpu.pipeline_mode<synchronous>, transform_indices = @transform_1, window_bounds = array<i64: 32, 2>}, {pipeline_mode = #tpu.pipeline_mode<synchronous>, transform_indices = @transform_2, window_bounds = array<i64: 32, 1>}, {pipeline_mode = #tpu.pipeline_mode<synchronous>, transform_indices = @transform_3, window_bounds = array<i64: 32, 32>}, {pipeline_mode = #tpu.pipeline_mode<synchronous>, transform_indices = @transform_4, window_bounds = array<i64: 32, 1>}, {pipeline_mode = #tpu.pipeline_mode<synchronous>, transform_indices = @transform_5, window_bounds = array<i64: 32, 32>}, {pipeline_mode = #tpu.pipeline_mode<synchronous>, transform_indices = @transform_6, window_bounds = array<i64: 32, 1>}, {pipeline_mode = #tpu.pipeline_mode<synchronous>, transform_indices = @transform_7, window_bounds = array<i64: 32, 32>}, {pipeline_mode = #tpu.pipeline_mode<synchronous>, transform_indices = @transform_8, window_bounds = array<i64: 32, 1>}, {pipeline_mode = #tpu.pipeline_mode<synchronous>, transform_indices = @transform_9, window_bounds = array<i64: 1, 32>}, {pipeline_mode = #tpu.pipeline_mode<synchronous>, transform_indices = @transform_10, window_bounds = array<i64: 1, 1>}, {transform_indices = @transform_11, window_bounds = array<i64: 1, 128>}]} {
    %c0 = arith.constant 0 : index
    %c0_0 = arith.constant 0 : index
    %0 = vector.load %arg1[%c0, %c0_0] : memref<2x128xf32, #tpu.memory_space<vmem>>, vector<2x128xf32>
    %c0_1 = arith.constant 0 : index
    %c0_2 = arith.constant 0 : index
    %1 = vector.load %arg2[%c0_1, %c0_2] : memref<32x2xf32, #tpu.memory_space<vmem>>, vector<32x2xf32>
    %cst = arith.constant dense<0.000000e+00> : vector<32x128xf32>
    %2 = tpu.matmul %1, %0, %cst {dimension_numbers = #tpu.dot_dimension_numbers<[1], [0], [0], [1], [0, 0, 1, 1], [], []>} : vector<32x2xf32>, vector<2x128xf32>, vector<32x128xf32> -> vector<32x128xf32>
    %c0_3 = arith.constant 0 : index
    %c0_4 = arith.constant 0 : index
    %3 = vector.load %arg3[%c0_3, %c0_4] : memref<32x1xf32, #tpu.memory_space<vmem>>, vector<32x1xf32>
    %4 = vector.broadcast %3 : vector<32x1xf32> to vector<32x128xf32>
    %5 = arith.addf %2, %4 : vector<32x128xf32>
    %6 = math.tanh %5 : vector<32x128xf32>
    %c0_5 = arith.constant 0 : index
    %c0_6 = arith.constant 0 : index
    %7 = vector.load %arg4[%c0_5, %c0_6] : memref<32x32xf32, #tpu.memory_space<vmem>>, vector<32x32xf32>
    %cst_7 = arith.constant dense<0.000000e+00> : vector<32x128xf32>
    %8 = tpu.matmul %7, %6, %cst_7 {dimension_numbers = #tpu.dot_dimension_numbers<[1], [0], [0], [1], [0, 0, 1, 1], [], []>} : vector<32x32xf32>, vector<32x128xf32>, vector<32x128xf32> -> vector<32x128xf32>
    %c0_8 = arith.constant 0 : index
    %c0_9 = arith.constant 0 : index
    %9 = vector.load %arg5[%c0_8, %c0_9] : memref<32x1xf32, #tpu.memory_space<vmem>>, vector<32x1xf32>
    %10 = vector.broadcast %9 : vector<32x1xf32> to vector<32x128xf32>
    %11 = arith.addf %8, %10 : vector<32x128xf32>
    %12 = math.tanh %11 : vector<32x128xf32>
    %c0_10 = arith.constant 0 : index
    %c0_11 = arith.constant 0 : index
    %13 = vector.load %arg6[%c0_10, %c0_11] : memref<32x32xf32, #tpu.memory_space<vmem>>, vector<32x32xf32>
    %cst_12 = arith.constant dense<0.000000e+00> : vector<32x128xf32>
    %14 = tpu.matmul %13, %12, %cst_12 {dimension_numbers = #tpu.dot_dimension_numbers<[1], [0], [0], [1], [0, 0, 1, 1], [], []>} : vector<32x32xf32>, vector<32x128xf32>, vector<32x128xf32> -> vector<32x128xf32>
    %c0_13 = arith.constant 0 : index
    %c0_14 = arith.constant 0 : index
    %15 = vector.load %arg7[%c0_13, %c0_14] : memref<32x1xf32, #tpu.memory_space<vmem>>, vector<32x1xf32>
    %16 = vector.broadcast %15 : vector<32x1xf32> to vector<32x128xf32>
    %17 = arith.addf %14, %16 : vector<32x128xf32>
    %18 = math.tanh %17 : vector<32x128xf32>
    %19 = arith.addf %18, %6 : vector<32x128xf32>
    %c0_15 = arith.constant 0 : index
    %c0_16 = arith.constant 0 : index
    %20 = vector.load %arg8[%c0_15, %c0_16] : memref<32x32xf32, #tpu.memory_space<vmem>>, vector<32x32xf32>
    %cst_17 = arith.constant dense<0.000000e+00> : vector<32x128xf32>
    %21 = tpu.matmul %20, %19, %cst_17 {dimension_numbers = #tpu.dot_dimension_numbers<[1], [0], [0], [1], [0, 0, 1, 1], [], []>} : vector<32x32xf32>, vector<32x128xf32>, vector<32x128xf32> -> vector<32x128xf32>
    %c0_18 = arith.constant 0 : index
    %c0_19 = arith.constant 0 : index
    %22 = vector.load %arg9[%c0_18, %c0_19] : memref<32x1xf32, #tpu.memory_space<vmem>>, vector<32x1xf32>
    %23 = vector.broadcast %22 : vector<32x1xf32> to vector<32x128xf32>
    %24 = arith.addf %21, %23 : vector<32x128xf32>
    %25 = math.tanh %24 : vector<32x128xf32>
    %26 = arith.addf %25, %12 : vector<32x128xf32>
    %c0_20 = arith.constant 0 : index
    %c0_21 = arith.constant 0 : index
    %27 = vector.load %arg10[%c0_20, %c0_21] : memref<1x32xf32, #tpu.memory_space<vmem>>, vector<1x32xf32>
    %cst_22 = arith.constant dense<0.000000e+00> : vector<1x128xf32>
    %28 = tpu.matmul %27, %26, %cst_22 {dimension_numbers = #tpu.dot_dimension_numbers<[1], [0], [0], [1], [0, 0, 1, 1], [], []>} : vector<1x32xf32>, vector<32x128xf32>, vector<1x128xf32> -> vector<1x128xf32>
    %c0_23 = arith.constant 0 : index
    %c0_24 = arith.constant 0 : index
    %29 = vector.load %arg11[%c0_23, %c0_24] : memref<1x1xf32, #tpu.memory_space<vmem>>, vector<1x1xf32>
    %30 = vector.broadcast %29 : vector<1x1xf32> to vector<1x128xf32>
    %31 = arith.addf %28, %30 : vector<1x128xf32>
    %c0_25 = arith.constant 0 : index
    %c0_26 = arith.constant 0 : index
    %32 = vector.load %arg12[%c0_25, %c0_26] : memref<1x128xf32, #tpu.memory_space<vmem>>, vector<1x128xf32>
    tpu.vector_store %arg12[%c0_25, %c0_26], %31 {strides = array<i32>} : memref<1x128xf32, #tpu.memory_space<vmem>>, vector<1x128xf32>,
    return
  }
  func.func @transform_0(%arg0: i32) -> (i32, i32) {
    %c0_i32 = arith.constant 0 : i32
    %c0_i32_0 = arith.constant 0 : i32
    return %c0_i32, %arg0 : i32, i32
  }
  func.func @transform_1(%arg0: i32) -> (i32, i32) {
    %c0_i32 = arith.constant 0 : i32
    %c0_i32_0 = arith.constant 0 : i32
    %c0_i32_1 = arith.constant 0 : i32
    return %c0_i32, %c0_i32_0 : i32, i32
  }
  func.func @transform_2(%arg0: i32) -> (i32, i32) {
    %c0_i32 = arith.constant 0 : i32
    %c0_i32_0 = arith.constant 0 : i32
    %c0_i32_1 = arith.constant 0 : i32
    return %c0_i32, %c0_i32_0 : i32, i32
  }
  func.func @transform_3(%arg0: i32) -> (i32, i32) {
    %c0_i32 = arith.constant 0 : i32
    %c0_i32_0 = arith.constant 0 : i32
    %c0_i32_1 = arith.constant 0 : i32
    return %c0_i32, %c0_i32_0 : i32, i32
  }
  func.func @transform_4(%arg0: i32) -> (i32, i32) {
    %c0_i32 = arith.constant 0 : i32
    %c0_i32_0 = arith.constant 0 : i32
    %c0_i32_1 = arith.constant 0 : i32
    return %c0_i32, %c0_i32_0 : i32, i32
  }
  func.func @transform_5(%arg0: i32) -> (i32, i32) {
    %c0_i32 = arith.constant 0 : i32
    %c0_i32_0 = arith.constant 0 : i32
    %c0_i32_1 = arith.constant 0 : i32
    return %c0_i32, %c0_i32_0 : i32, i32
  }
  func.func @transform_6(%arg0: i32) -> (i32, i32) {
    %c0_i32 = arith.constant 0 : i32
    %c0_i32_0 = arith.constant 0 : i32
    %c0_i32_1 = arith.constant 0 : i32
    return %c0_i32, %c0_i32_0 : i32, i32
  }
  func.func @transform_7(%arg0: i32) -> (i32, i32) {
    %c0_i32 = arith.constant 0 : i32
    %c0_i32_0 = arith.constant 0 : i32
    %c0_i32_1 = arith.constant 0 : i32
    return %c0_i32, %c0_i32_0 : i32, i32
  }
  func.func @transform_8(%arg0: i32) -> (i32, i32) {
    %c0_i32 = arith.constant 0 : i32
    %c0_i32_0 = arith.constant 0 : i32
    %c0_i32_1 = arith.constant 0 : i32
    return %c0_i32, %c0_i32_0 : i32, i32
  }
  func.func @transform_9(%arg0: i32) -> (i32, i32) {
    %c0_i32 = arith.constant 0 : i32
    %c0_i32_0 = arith.constant 0 : i32
    %c0_i32_1 = arith.constant 0 : i32
    return %c0_i32, %c0_i32_0 : i32, i32
  }
  func.func @transform_10(%arg0: i32) -> (i32, i32) {
    %c0_i32 = arith.constant 0 : i32
    %c0_i32_0 = arith.constant 0 : i32
    %c0_i32_1 = arith.constant 0 : i32
    return %c0_i32, %c0_i32_0 : i32, i32
  }
  func.func @transform_11(%arg0: i32) -> (i32, i32) {
    %c0_i32 = arith.constant 0 : i32
    %c0_i32_0 = arith.constant 0 : i32
    return %c0_i32, %arg0 : i32, i32
  }
}

</mosaic_0001>

<bundles_post_ra>
// kernel: multilayer_net_forward.1
= control target key start
LH: loop header
LB: loop body
LE: loop exit
PB: predicated region body
PF: predicated region fallthrough
CT: control target
= control target key end

     0   :  { %s1317_s19 = smov 0   ;;  %s1486_s0 = inlined_call_operand.vmem [shape: f32[2,256], index: 0, kind: input, shape index: {}]   ;;  %s1487_s1 = inlined_call_operand.vmem [shape: f32[32,2], index: 1, kind: input, shape index: {}]   ;;  %s1488_s2 = inlined_call_operand.vmem [shape: f32[32,1], index: 2, kind: input, shape index: {}]   ;;  %s1489_s3 = inlined_call_operand.vmem [shape: f32[32,32], index: 3, kind: input, shape index: {}]   ;;  %s1490_s4 = inlined_call_operand.vmem [shape: f32[32,1], index: 4, kind: input, shape index: {}]   ;;  %s1491_s5 = inlined_call_operand.vmem [shape: f32[32,32], index: 5, kind: input, shape index: {}]   ;;  %s1492_s6 = inlined_call_operand.vmem [shape: f32[32,1], index: 6, kind: input, shape index: {}]   ;;  %s1493_s7 = inlined_call_operand.vmem [shape: f32[32,32], index: 7, kind: input, shape index: {}]   ;;  %s1494_s8 = inlined_call_operand.vmem [shape: f32[32,1], index: 8, kind: input, shape index: {}]   ;;  %s1495_s9 = inlined_call_operand.vmem [shape: f32[1,32], index: 9, kind: input, shape index: {}]   ;;  %s1496_s10 = inlined_call_operand.<no memory space> [shape: f32[1,1], index: 10, kind: input, shape index: {}]   ;;  %s1497_s11 = inlined_call_operand.vmem [shape: f32[1,256], index: 11, kind: output, shape index: {}]  }
   0x1   :  { %v16_v0 = vstv %s1496_s10 }
   0x2   :  { %17 = vst [vmem:[#allocation2] sm:$0x1] %v16_v0 }
   0x3 LB: > { %s1045_s20 = sadd.s32 4294967295, %s1248_s19   ;;  %p1049_p0 = scmp.ge.s32.totalorder %s1248_s19, 1  ;;  %s1248_s19 = sphi %s1317_s19, %s23_s19  }
   0x4   : > { %p338_p1 = scmp.lt.s32.totalorder %s1248_s19, 3 }
   0x6   : > { %p339_p2 = pnand %p1049_p0, %p338_p1 }
   0x7   : > { %p375_p3 = scmp.lt.s32.totalorder (!%p339_p2), %s1045_s20, 1  ;;  %v383_v1 = vld [vmem:[%s1487_s1] sm:$0xff] (!%p339_p2)  ;;  %vm411_vm0 = vcmask (!%p339_p2), 15360   ;;  %v1250_v3 = vmov (!%p339_p2), 0   ;;  %v389_v4 = vld [vmem:[%s1488_s2 + $0x10] sm:$0xff] (!%p339_p2)  ;;  %vm424_vm1 = vcmask (!%p339_p2), 1041408  }
   0x8   : > { %342 = sbr.rel (%p339_p2) target bundleno = 1183 (0x49f), region = 64  ;;  %1107 = vmatprep.mubr.msk.f32.mxu0 (!%p339_p2), %vm411_vm0, %v383_v1  ;;  %v387_v2 = vld [vmem:[%s1488_s2] sm:$0xff] (!%p339_p2)  ;;  %1208 = vset.pattern.permute.xlu0 (!%p339_p2), %v1250_v3  ;;  %v388_v5 = vld [vmem:[%s1488_s2 + $0x8] sm:$0xff] (!%p339_p2)  ;;  %v390_v6 = vld [vmem:[%s1488_s2 + $0x18] sm:$0xff] (!%p339_p2)  ;;  %vm545_vm2 = vcmask (!%p339_p2), 261120   ;;  %vm1252_vm3 = vmmov (!%p339_p2), 0  }
   0x9   : > { %1209 = vset.pattern.permute.xlu1 (!%p339_p2), %v1250_v3  ;;  %393 = vperm.xlu0 (!%p339_p2), %1208, %v387_v2   ;;  %v384_v8 = vld [vmem:[%s1487_s1 + $0x8] sm:$0xff] (!%p339_p2)  ;;  %v385_v9 = vld [vmem:[%s1487_s1 + $0x10] sm:$0xff] (!%p339_p2)  ;;  %v521_v10 = vld [vmem:[%s1490_s4] sm:$0xff] (!%p339_p2) }
   0xa   : > { %403 = vperm.xlu1 (!%p339_p2), %1209, %v389_v4   ;;  %v522_v11 = vld [vmem:[%s1490_s4 + $0x8] sm:$0xff] (!%p339_p2)  ;;  %v386_v12 = vld [vmem:[%s1487_s1 + $0x18] sm:$0xff] (!%p339_p2)  ;;  %v523_v13 = vld [vmem:[%s1490_s4 + $0x10] sm:$0xff] (!%p339_p2) }
   0xb   : > { %v524_v14 = vld [vmem:[%s1490_s4 + $0x18] sm:$0xff] (!%p339_p2)  ;;  %v651_v15 = vld [vmem:[%s1492_s6] sm:$0xff] (!%p339_p2)  ;;  %v652_v16 = vld [vmem:[%s1492_s6 + $0x8] sm:$0xff] (!%p339_p2) }
   0xc   : > { %v653_v17 = vld [vmem:[%s1492_s6 + $0x10] sm:$0xff] (!%p339_p2)  ;;  %v654_v18 = vld [vmem:[%s1492_s6 + $0x18] sm:$0xff] (!%p339_p2)  ;;  %v784_v19 = vld [vmem:[%s1494_s8] sm:$0xff] (!%p339_p2) }
   0xd   : > { %398 = vperm.xlu0 (!%p339_p2), %1208, %v388_v5   ;;  %v785_v20 = vld [vmem:[%s1494_s8 + $0x8] sm:$0xff] (!%p339_p2)  ;;  %v786_v21 = vld [vmem:[%s1494_s8 + $0x10] sm:$0xff] (!%p339_p2)  ;;  %v787_v22 = vld [vmem:[%s1494_s8 + $0x18] sm:$0xff] (!%p339_p2) }
   0xe   : > { %408 = vperm.xlu1 (!%p339_p2), %1209, %v390_v6   ;;  %v914_v23 = vld [vmem:[#allocation2] sm:$0x1] (!%p339_p2)  ;;  %v518_v43 = vld [vmem:[%s1489_s3 + $0x8] sm:$0xff] (!%p339_p2)  ;;  %v519_v44 = vld [vmem:[%s1489_s3 + $0x10] sm:$0xff] (!%p339_p2) }
   0xf   : > { %s1499_s20 = smov (!%p375_p3, %s1045_s20), 1  ;;  %v517_v24 = vld [vmem:[%s1489_s3] sm:$0xff]  ;;  %v520_v45 = vld [vmem:[%s1489_s3 + $0x18] sm:$0xff]  ;;  %v648_v1 = vld [vmem:[%s1491_s5 + $0x8] sm:$0xff] }
  0x10   : > { %s1050_s26 = sshll.u32 %s1499_s20, 1  ;;  %1121 = vmatprep.mubr.msk.f32.mxu1 %vm545_vm2, %v517_v24  ;;  %v647_v46 = vld [vmem:[%s1491_s5] sm:$0xff]  ;;  %v649_v2 = vld [vmem:[%s1491_s5 + $0x10] sm:$0xff]  ;;  %v650_v3 = vld [vmem:[%s1491_s5 + $0x18] sm:$0xff]  ;;  %s381_s21 = scalar_lea.vmem %s1497_s11, %s1499_s20 }
  0x11   : > { %s378_s12 = scalar_lea.vmem %s1486_s0, %s1050_s26  ;;  %527 = vperm.xlu0 %1208, %v521_v10   ;;  %v780_v4 = vld [vmem:[%s1493_s7] sm:$0xff] }
  0x12   : > { %v382_v7 = vld [vmem:[%s378_s12] sm:$0x3]  ;;  %532 = vperm.xlu1 %1209, %v522_v11  }
  0x13   : > { %1105 = vmatprep.subr.msk.mxu0 %vm424_vm1, %v382_v7 }
  0x14   : > { %1106 = vmatpush3.msk.msra.mxu0 %vm424_vm1, %v382_v7 }
  0x15   : > { %1108 = vmatmul.mubr.msk.f32.vlgmr.msra.gmra.mrb[0].mxu0 %vm411_vm0, %v384_v8  ;;  %537 = vperm.xlu0 %1208, %v523_v13  }
  0x16   : > { %1110 = vmatprep.mubr.msk.f32.mxu0 %vm411_vm0, %v385_v9  ;;  %542 = vperm.xlu1 %1209, %v524_v14  }
  0x19   : > { %1111 = vmatmul.mubr.msk.f32.gmra.mrb[2].mxu0 %vm411_vm0, %v386_v12  ;;  %657 = vperm.xlu0 %1208, %v651_v15  }
  0x1a   : > { %662 = vperm.xlu1 %1209, %v652_v16   ;;  %1135 = vmatprep.mubr.msk.f32.mxu0 %vm545_vm2, %v647_v46 }
  0x1d   : > { %667 = vperm.xlu0 %1208, %v653_v17  }
  0x1e   : > { %672 = vperm.xlu1 %1209, %v654_v18  }
  0x21   : > { %790 = vperm.xlu0 %1208, %v784_v19  }
  0x22   : > { %795 = vperm.xlu1 %1209, %v785_v20  }
  0x25   : > { %800 = vperm.xlu0 %1208, %v786_v21  }
  0x26   : > { %805 = vperm.xlu1 %1209, %v787_v22  }
  0x29   : > { %917 = vperm.xlu0 %1208, %v914_v23  }
  0x88   : > { %v394_v25 = vpop.permute.xlu0 %393 }
  0x89   : > { %v404_v26 = vpop.permute.xlu1 %403 }
  0x8c   : > { %v399_v27 = vpop.permute.xlu0 %398 }
  0x8d   : > { %v409_v32 = vpop.permute.xlu1 %408 }
  0x90   : > { %v528_v48 = vpop.permute.xlu0 %527 }
  0x91   : > { %v533_v47 = vpop.permute.xlu1 %532 }
  0x94   : > { %v538_v55 = vpop.permute.xlu0 %537 }
  0x95   : > { %v543_v53 = vpop.permute.xlu1 %542 }
  0x98   : > { %v658_v6 = vpop.permute.xlu0 %657 }
  0x99   : > { %v663_v5 = vpop.permute.xlu1 %662 }
  0x9c   : > { %v668_v13 = vpop.permute.xlu0 %667 }
  0x9d   : > { %v673_v11 = vpop.permute.xlu1 %672 }
  0xe8   : > { %v1109_v28 = vpop.f32.mrb[0].mxu0 }
  0xe9   : > { %v500_v29 = vadd.f32 %v1109_v28, %v399_v27  ;;  %v494_v30 = vpop.f32.mrb[1].mxu0  ;;  %v781_v27 = vld [vmem:[%s1493_s7 + $0x8] sm:$0xff]  ;;  %v782_v28 = vld [vmem:[%s1493_s7 + $0x10] sm:$0xff] }
  0xea   : > { %v495_v31 = vadd.f32 %v494_v30, %v394_v25  ;;  %v1251_v30 = vmov 0.0|0.0  }
  0xeb   : > { %1210 = vtanh.f32 %v500_v29  ;;  %v783_v29 = vld [vmem:[%s1493_s7 + $0x18] sm:$0xff] }
  0xec   : > { %1212 = vtanh.f32 %v495_v31  ;;  %v1112_v33 = vpop.f32.mrb[2].mxu0  ;;  %v1253_v31 = vmov 0.0  }
  0xed   : > { %v510_v34 = vadd.f32 %v1112_v33, %v409_v32  ;;  %v504_v35 = vpop.f32.mrb[3].mxu0  ;;  %v796_v32 = vpop.permute.xlu1 %795 }
  0xee   : > { %v505_v36 = vadd.f32 %v504_v35, %v404_v26  ;;  %v791_v33 = vpop.permute.xlu0 %790 }
  0xef   : > { %1214 = vtanh.f32 %v510_v34 }
  0xf0   : > { %1216 = vtanh.f32 %v505_v36 }
  0xf5   : > { %v1399_v37 = vpop.eup %1210 }
  0xf6   : > { %v1401_v38 = vpop.eup %1212 }
  0xf7   : > { %v1166_v39 = vpack.c.bf16 %v1399_v37, %v1401_v38 }
  0xf9   : > { %v1405_v40 = vpop.eup %1214  ;;  %1167 = vmatprep.subr.bf16.mxu1 %v1166_v39 }
  0xfa   : > { %v1407_v41 = vpop.eup %1216  ;;  %1169 = vmatpush3.bf16.msra.mxu1 %v1166_v39 }
  0xfb   : > { %v1170_v42 = vpack.c.bf16 %v1405_v40, %v1407_v41 }
  0xfd   : > { %1171 = vmatprep.subr.bf16.mxu1 %v1170_v42 }
  0xfe   : > { %1173 = vmatpush3.bf16.msra.mxu1 %v1170_v42 }
 0x101   : > { %1122 = vmatmul.mubr.msk.f32.vlgmr.msra.gmra.mrb[0].mxu1 %vm545_vm2, %v518_v43 }
 0x102   : > { %1124 = vmatprep.mubr.msk.f32.mxu1 %vm545_vm2, %v519_v44 }
 0x105   : > { %1125 = vmatmul.mubr.msk.f32.gmra.mrb[2].mxu1 %vm545_vm2, %v520_v45 }
 0x106   : > { %1149 = vmatprep.mubr.msk.f32.mxu1 %vm545_vm2, %v780_v4 }
 0x1d4   : > { %v1123_v49 = vpop.f32.mrb[0].mxu1 }
 0x1d5   : > { %v630_v50 = vadd.f32 %v1123_v49, %v533_v47  ;;  %v624_v51 = vpop.f32.mrb[1].mxu1 }
 0x1d6   : > { %v625_v52 = vadd.f32 %v624_v51, %v528_v48 }
 0x1d7   : > { %1218 = vtanh.f32 %v630_v50 }
 0x1d8   : > { %1220 = vtanh.f32 %v625_v52  ;;  %v1126_v54 = vpop.f32.mrb[2].mxu1 }
 0x1d9   : > { %v640_v56 = vadd.f32 %v1126_v54, %v543_v53  ;;  %v634_v57 = vpop.f32.mrb[3].mxu1  ;;  %v913_v54 = vld [vmem:[%s1495_s9] sm:$0x1] }
 0x1da   : > { %v635_v58 = vadd.f32 %v634_v57, %v538_v55  ;;  %v920_v55 = vlaneseq }
 0x1db   : > { %1222 = vtanh.f32 %v640_v56 }
 0x1dc   : > { %1224 = vtanh.f32 %v635_v58  ;;  %v921_v56 = vshrl.u32 %v920_v55, 7 }
 0x1de   : > { %v922_v57 = vsub.s32 0, %v921_v56 }
 0x1e1   : > { %v1427_v59 = vpop.eup %1218 }
 0x1e2   : > { %v1429_v60 = vpop.eup %1220 }
 0x1e3   : > { %v1174_v61 = vpack.c.bf16 %v1427_v59, %v1429_v60 }
 0x1e5   : > { %v1433_v62 = vpop.eup %1222  ;;  %1175 = vmatprep.subr.bf16.mxu0 %v1174_v61 }
 0x1e6   : > { %v1435_v63 = vpop.eup %1224  ;;  %1177 = vmatpush3.bf16.msra.mxu0 %v1174_v61 }
 0x1e7   : > { %v1178_v0 = vpack.c.bf16 %v1433_v62, %v1435_v63 }
 0x1e9   : > { %1179 = vmatprep.subr.bf16.mxu0 %v1178_v0 }
 0x1ea   : > { %1181 = vmatpush3.bf16.msra.mxu0 %v1178_v0 }
 0x1eb   : > { %1190 = vmatprep.subr.bf16.mxu0 %v1251_v30 }
 0x1ed   : > { %1136 = vmatmul.mubr.msk.f32.vlgmr.msra.gmra.mrb[4].mxu0 %vm545_vm2, %v648_v1 }
 0x1ee   : > { %1138 = vmatprep.mubr.msk.f32.mxu0 %vm545_vm2, %v649_v2 }
 0x1f1   : > { %1139 = vmatmul.mubr.msk.f32.gmra.mrb[6].mxu0 %vm545_vm2, %v650_v3 }
 0x1f2   : > { %1163 = vmatprep.mubr.msk.f32.mxu0 %vm1252_vm3, %v1253_v31 }
 0x2c0   : > { %v1137_v7 = vpop.f32.mrb[4].mxu0 }
 0x2c1   : > { %v759_v8 = vadd.f32 %v1137_v7, %v663_v5  ;;  %v753_v9 = vpop.f32.mrb[5].mxu0 }
 0x2c2   : > { %v754_v10 = vadd.f32 %v753_v9, %v658_v6 }
 0x2c3   : > { %1226 = vtanh.f32 %v759_v8 }
 0x2c4   : > { %1228 = vtanh.f32 %v754_v10  ;;  %v1140_v12 = vpop.f32.mrb[6].mxu0 }
 0x2c5   : > { %v769_v14 = vadd.f32 %v1140_v12, %v673_v11  ;;  %v763_v15 = vpop.f32.mrb[7].mxu0 }
 0x2c6   : > { %v764_v16 = vadd.f32 %v763_v15, %v668_v13 }
 0x2c7   : > { %1230 = vtanh.f32 %v769_v14 }
 0x2c8   : > { %1232 = vtanh.f32 %v764_v16 }
 0x2cd   : > { %v1227_v17 = vpop.eup %1226 }
 0x2ce   : > { %v1229_v18 = vpop.eup %1228  ;;  %v777_v19 = vadd.f32 %v1227_v17, %v1399_v37 }
 0x2cf   : > { %v776_v20 = vadd.f32 %v1229_v18, %v1401_v38  ;;  %v806_v38 = vpop.permute.xlu1 %805 }
 0x2d1   : > { %v1231_v21 = vpop.eup %1230  ;;  %v1182_v22 = vpack.c.bf16 %v777_v19, %v776_v20 }
 0x2d2   : > { %v1233_v23 = vpop.eup %1232  ;;  %v779_v24 = vadd.f32 %v1231_v21, %v1405_v40  ;;  %v801_v40 = vpop.permute.xlu0 %800 }
 0x2d3   : > { %1183 = vmatprep.subr.bf16.mxu1 %v1182_v22  ;;  %v778_v25 = vadd.f32 %v1233_v23, %v1407_v41 }
 0x2d4   : > { %1185 = vmatpush3.bf16.msra.mxu1 %v1182_v22 }
 0x2d5   : > { %v1186_v26 = vpack.c.bf16 %v779_v24, %v778_v25 }
 0x2d6   : > { %v918_v58 = vpop.permute.xlu0 %917 }
 0x2d7   : > { %1187 = vmatprep.subr.bf16.mxu1 %v1186_v26 }
 0x2d8   : > { %1189 = vmatpush3.bf16.msra.mxu1 %v1186_v26 }
 0x2db   : > { %1150 = vmatmul.mubr.msk.f32.vlgmr.msra.gmra.mrb[4].mxu1 %vm545_vm2, %v781_v27 }
 0x2dc   : > { %1152 = vmatprep.mubr.msk.f32.mxu1 %vm545_vm2, %v782_v28 }
 0x2df   : > { %1153 = vmatmul.mubr.msk.f32.gmra.mrb[6].mxu1 %vm545_vm2, %v783_v29 }
 0x3ae   : > { %v1151_v34 = vpop.f32.mrb[4].mxu1 }
 0x3af   : > { %v892_v35 = vadd.f32 %v1151_v34, %v796_v32  ;;  %v886_v36 = vpop.f32.mrb[5].mxu1 }
 0x3b0   : > { %v887_v37 = vadd.f32 %v886_v36, %v791_v33 }
 0x3b1   : > { %1234 = vtanh.f32 %v892_v35 }
 0x3b2   : > { %1236 = vtanh.f32 %v887_v37  ;;  %v1154_v39 = vpop.f32.mrb[6].mxu1 }
 0x3b3   : > { %v902_v41 = vadd.f32 %v1154_v39, %v806_v38  ;;  %v896_v42 = vpop.f32.mrb[7].mxu1 }
 0x3b4   : > { %v897_v43 = vadd.f32 %v896_v42, %v801_v40 }
 0x3b5   : > { %1238 = vtanh.f32 %v902_v41 }
 0x3b6   : > { %1240 = vtanh.f32 %v897_v43 }
 0x3bb   : > { %v1235_v44 = vpop.eup %1234 }
 0x3bc   : > { %v1237_v45 = vpop.eup %1236  ;;  %v910_v46 = vadd.f32 %v1235_v44, %v1427_v59  ;;  %v923_v59 = vrot.slane %v918_v58, %v922_v57 }
 0x3bd   : > { %v909_v47 = vadd.f32 %v1237_v45, %v1429_v60 }
 0x3bf   : > { %v1239_v48 = vpop.eup %1238  ;;  %v1191_v49 = vpack.c.bf16 %v910_v46, %v909_v47 }
 0x3c0   : > { %v1241_v50 = vpop.eup %1240  ;;  %v912_v51 = vadd.f32 %v1239_v48, %v1433_v62 }
 0x3c1   : > { %1192 = vmatpush3.bf16.msra.mxu0 %v1191_v49  ;;  %v911_v52 = vadd.f32 %v1241_v50, %v1435_v63 }
 0x3c2   : > { %1193 = vmatprep.subr.bf16.mxu0 %v1251_v30 }
 0x3c3   : > { %v1194_v53 = vpack.c.bf16 %v912_v51, %v911_v52 }
 0x3c5   : > { %1195 = vmatpush3.bf16.msra.mxu0 %v1194_v53 }
 0x3c8   : > { %1164 = vmatmul.mubr.msk.f32.vlgmr.msra.gmra.mrb[8].mxu0 %vm545_vm2, %v913_v54 }
 0x49b   : > { %v993_v60 = vpop.f32.mrb[8].mxu0 }
 0x49c   : > { %v994_v61 = vadd.f32 %v993_v60, %v923_v59  ;;  %v1165_v62 = vpop.f32.mrb[9].mxu0 }
 0x49e   : > { %997 = vst [vmem:[%s381_s21] sm:$0x1] %v994_v61 }
 0x49f PF: > { %s23_s19 = sadd.s32 1, %s1248_s19  }
 0x4a0   : > { %p20_p4 = scmp.ge.s32.totalorder %s23_s19, 4  }
 0x4a2   :  { %22 = sbr.rel (!%p20_p4) target bundleno = 3 (0x3), region = 94 }

</bundles_post_ra>
